<compile_context>
chip_gen: v5e
topology: v5e:2x2
jax: 0.10.0
libtpu: 0.0.40
codegen_flags: <defaults>
</compile_context>

<pallas_src>
import jax
import jax.numpy as jnp
from jax.experimental import pallas as pl


def _identity_noop_kernel(x_ref, o_ref):
    # Output aliases the input buffer; nothing to read, compute, or write.
    del x_ref, o_ref


def identity(x: jax.Array) -> jax.Array:
    """Identity forward pass (nn.Identity) as a zero-data-movement Pallas kernel."""
    if x.size == 0:
        # Degenerate empty tensor: identity is trivially x itself.
        return x

    return pl.pallas_call(
        _identity_noop_kernel,
        out_shape=jax.ShapeDtypeStruct(x.shape, x.dtype),
        # ANY memory space: refs stay in HBM, no auto-DMA is generated, and no
        # tiling / (8,128) / VMEM constraints apply for any shape or dtype.
        in_specs=[pl.BlockSpec(memory_space=pl.ANY)],
        out_specs=pl.BlockSpec(memory_space=pl.ANY),
        # Output buffer is the input buffer: zero HBM traffic when donatable.
        input_output_aliases={0: 0},
    )(x)


if __name__ == "__main__":
    key = jax.random.PRNGKey(0)
    # Small NCHW input: batch=2, channels=4, spatial=16x16.
    x = jax.random.normal(key, (2, 4, 16, 16), dtype=jnp.float32)

    y = identity(x)
    jax.block_until_ready(y)

    assert y.shape == x.shape
    assert y.dtype == x.dtype
    assert bool(jnp.all(y == x))

    print("KERNEL_OK")
</pallas_src>

<mosaic_0001>
module attributes {stable_mosaic.version = 11 : i64} {
  func.func @_identity_noop_kernel(%arg0: memref<2x4x16x16xf32, #tpu.memory_space<any>>, %arg1: memref<2x4x16x16xf32, #tpu.memory_space<any>>) attributes {dimension_semantics = [], scalar_prefetch = 0 : i64, scratch_operands = 0 : i64, tpu.core_type = #tpu.core_type<tc>} {
    return
  }
}

</mosaic_0001>

<bundles_post_ra>
// kernel: tpu_custom_call.1
= control target key start
LH: loop header
LB: loop body
LE: loop exit
PB: predicated region body
PF: predicated region fallthrough
CT: control target
= control target key end

     0   :  { %s16_s0 = inlined_call_operand.hbm [shape: f32[2,4,16,16], index: 0, kind: input, shape index: {}, may-alias: {0,1}]   ;;  %s17_s1 = inlined_call_operand.hbm [shape: f32[2,4,16,16], index: 1, kind: output, shape index: {}, may-alias: {0,1}]  }

</bundles_post_ra>
